<compile_context>
chip_gen: v7x
topology: tpu7x:2x2x1
jax: 0.10.0
libtpu: 0.0.40
codegen_flags: <defaults>
</compile_context>

<pallas_src>
import functools

import jax
import jax.numpy as jnp
from jax.experimental import pallas as pl
from jax.experimental.pallas import tpu as pltpu


def _round_up(x, m):
    return (x + m - 1) // m * m


def _vmem_capacity_bytes():
    try:
        return int(pltpu.get_tpu_info().vmem_capacity_bytes)
    except Exception:
        return 64 << 20  # conservative fallback (v7x per-TensorCore VMEM)


def _hw_tile_candidates(HW, hw_tile):
    """Lane-aligned HW tile sizes that divide HW exactly (largest first)."""
    if hw_tile is not None and (hw_tile == HW or
                                (HW % hw_tile == 0 and hw_tile % 128 == 0)):
        return [hw_tile]
    if HW % 128 == 0:
        return [d for d in range(HW, 127, -128) if HW % d == 0]
    # HW not lane-aligned (7x7, 14x14, ...): single full-extent HW block and rely
    # on the batch axis for pipelining.
    # TODO(synk): mask a cdiv HW tiling instead of using a full-extent block.
    return [HW]


def _choose_tiles(N, C, HW, out_cols, weight_bytes, budget, hw_tile):
    """Pick (TN, THW) from a VMEM budget; big DMAs, >=2 parallel steps when possible."""
    chosen = None
    for thw in _hw_tile_candidates(HW, hw_tile):
        # VMEM bytes per batch row: x tile (f32, double-buffered) + acc + out (dbl-buf).
        per_row = 2 * C * thw * 4 + C * 4 + 2 * out_cols * 4
        avail = max(per_row, budget - weight_bytes)
        tn_cap = max(1, avail // per_row)
        if N <= 8:
            tn = N                                   # single batch tile (full-dim block)
        else:
            tn = min(256, tn_cap, _round_up(N, 8))   # MXU rows / VMEM / batch caps
            tn = max(8, (tn // 8) * 8)
            # v7x megacore: keep >= 2 steps on the "parallel" batch axis.
            while tn > 8 and -(-N // tn) < 2:
                tn = max(8, ((tn // 2) // 8) * 8)
        vmem_used = weight_bytes + tn * per_row
        chosen = (tn, thw, vmem_used)
        if vmem_used <= budget:
            return chosen
    return chosen


def wrapper_kernel(x_ref, wb_ref, bb_ref, w1_ref, b1_ref, w2_ref, b2_ref,
                   out_ref, acc_ref, *, inv_hw):
    # x_ref: [TN, C, THW] f32     acc_ref: [TN, C] f32 (persists across HW steps)
    j = pl.program_id(1)

    @pl.when(j == 0)
    def _init():
        acc_ref[...] = jnp.zeros_like(acc_ref)

    # Partial global-average pool: lane-axis (XLU) reduction of the f32 tile;
    # no dtype cast, no widened full-tile temporary.
    acc_ref[...] += jnp.sum(x_ref[...], axis=-1)

    @pl.when(j == pl.num_programs(1) - 1)
    def _finalize():
        pooled = acc_ref[...] * inv_hw                                   # [TN, C]
        # Synthetic backbone head: Linear(C, S) + ReLU
        feat = jnp.maximum(
            jnp.dot(pooled, wb_ref[...], preferred_element_type=jnp.float32)
            + bb_ref[...], 0.0)                                          # [TN, SP]
        # proj_head: Linear(S, T) -> ReLU -> Linear(T, T)
        h = jnp.maximum(
            jnp.dot(feat, w1_ref[...], preferred_element_type=jnp.float32)
            + b1_ref[...], 0.0)                                          # [TN, TP]
        out = (jnp.dot(h, w2_ref[...], preferred_element_type=jnp.float32)
               + b2_ref[...])                                            # [TN, TP]
        out_ref[...] = out.astype(out_ref.dtype)                         # lane-dense store


def wrapper_forward(x_nchw, params, *, hw_tile=None):
    """x_nchw: [N, C, H, W] float32 -> [N, t_dims] float32."""
    N, C, H, W = x_nchw.shape
    HW = H * W
    wb, bb, w1, b1, w2, b2 = params
    S, T = wb.shape[1], w1.shape[1]

    # ---- lane-dense zero padding of the tiny head dims (mathematically exact) ----
    SP = _round_up(S, 128)
    TP = _round_up(T, 128)
    wb_p = jnp.pad(wb, ((0, 0), (0, SP - S)))
    bb_p = jnp.pad(bb, ((0, 0), (0, SP - S)))
    w1_p = jnp.pad(w1, ((0, SP - S), (0, TP - T)))
    b1_p = jnp.pad(b1, ((0, 0), (0, TP - T)))
    w2_p = jnp.pad(w2, ((0, TP - T), (0, TP - T)))
    b2_p = jnp.pad(b2, ((0, 0), (0, TP - T)))

    # x consumed as-is (f32): metadata-only reshape, no cast / no batch pad in HBM.
    # NOTE: for tiny C (like this demo) C on the sublane axis wastes some packing;
    # a real backbone (C >= 64) fills the 8-row f32 sublane group.
    x = x_nchw.reshape(N, C, HW)

    weight_bytes = (C * SP + SP * TP + TP * TP + SP + 2 * TP) * 4
    cap = _vmem_capacity_bytes()
    budget = int(0.45 * cap)                     # generation-aware soft VMEM budget
    TN, THW, vmem_used = _choose_tiles(N, C, HW, TP, weight_bytes, budget, hw_tile)
    assert HW % THW == 0                         # exact HW tiling keeps the sum exact

    grid_n = pl.cdiv(N, TN)
    grid_hw = HW // THW
    NP = grid_n * TN                             # output rows incl. cheap padded tail

    flops = 2 * N * C * HW + 2 * N * (C * SP + SP * TP + TP * TP)
    bytes_accessed = N * C * HW * 4 + weight_bytes + N * TP * 4
    vmem_limit = int(min(cap, max(2 * vmem_used + weight_bytes, 32 << 20)))

    kernel = functools.partial(wrapper_kernel, inv_hw=1.0 / HW)
    x_spec = pl.BlockSpec((TN, C, THW), lambda i, j: (i, 0, j))
    out_spec = pl.BlockSpec((TN, TP), lambda i, j: (i, 0))

    def _call(single_buffer_weights):
        if single_buffer_weights:
            mk = lambda shape: pl.BlockSpec(shape, lambda i, j: (0,) * len(shape),
                                            pipeline_mode=pl.Buffered(1))
        else:
            mk = lambda shape: pl.BlockSpec(shape, lambda i, j: (0,) * len(shape))
        return pl.pallas_call(
            kernel,
            out_shape=jax.ShapeDtypeStruct((NP, TP), jnp.float32),
            grid_spec=pltpu.PrefetchScalarGridSpec(
                num_scalar_prefetch=0,
                grid=(grid_n, grid_hw),
                in_specs=[
                    x_spec,            # streamed f32 activations
                    mk((C, SP)),       # wb  (resident)
                    mk((1, SP)),       # bb
                    mk((SP, TP)),      # w1
                    mk((1, TP)),       # b1
                    mk((TP, TP)),      # w2
                    mk((1, TP)),       # b2
                ],
                out_specs=out_spec,
                scratch_shapes=[pltpu.VMEM((TN, C), jnp.float32)],
            ),
            compiler_params=pltpu.CompilerParams(
                dimension_semantics=("parallel", "arbitrary"),
                vmem_limit_bytes=vmem_limit,
            ),
            cost_estimate=pl.CostEstimate(
                flops=flops, transcendentals=0, bytes_accessed=bytes_accessed),
        )(x, wb_p, bb_p, w1_p, b1_p, w2_p, b2_p)

    try:
        out_padded = _call(True)    # single-buffered resident weights (saves VMEM)
    except Exception:
        out_padded = _call(False)   # fallback: default double-buffering

    return out_padded[:N, :T]


def init_params(key, c_in, s_dims, t_dims):
    """Deterministic synthetic parameters (PyTorch-Linear-style uniform init)."""
    ks = jax.random.split(key, 6)

    def lin(kw, kb, fan_in, fan_out):
        bound = 1.0 / jnp.sqrt(fan_in)
        w = jax.random.uniform(kw, (fan_in, fan_out), jnp.float32, -bound, bound)
        b = jax.random.uniform(kb, (1, fan_out), jnp.float32, -bound, bound)
        return w, b

    wb, bb = lin(ks[0], ks[1], c_in, s_dims)      # synthetic backbone head
    w1, b1 = lin(ks[2], ks[3], s_dims, t_dims)    # proj_head Linear 1
    w2, b2 = lin(ks[4], ks[5], t_dims, t_dims)    # proj_head Linear 2
    return (wb, bb, w1, b1, w2, b2)


def reference_forward(x_nchw, params):
    """Pure-JAX f32 reference (matches the PyTorch module's numerics)."""
    wb, bb, w1, b1, w2, b2 = params
    pooled = jnp.mean(x_nchw.reshape(x_nchw.shape[0], x_nchw.shape[1], -1), axis=-1)
    feat = jnp.maximum(pooled @ wb + bb, 0.0)
    h = jnp.maximum(feat @ w1 + b1, 0.0)
    return h @ w2 + b2


if __name__ == "__main__":
    # Small shapes consistent with the module's forward (NCHW image input).
    N, C, H, W = 2, 4, 16, 16
    s_dims, t_dims = 32, 64     # teacher dim != student dim -> proj_head active

    key = jax.random.PRNGKey(0)
    kx, kp = jax.random.split(key)
    x = jax.random.normal(kx, (N, C, H, W), jnp.float32)
    params = init_params(kp, C, s_dims, t_dims)

    ref = reference_forward(x, params)

    # Auto-selected tiles (single HW step at this tiny spatial size).
    out = jax.block_until_ready(wrapper_forward(x, params))
    assert out.shape == (N, t_dims), out.shape
    assert jnp.allclose(out, ref, atol=2e-3, rtol=2e-3), \
        float(jnp.max(jnp.abs(out - ref)))

    # Force two HW steps to exercise the accumulate / finalize path.
    out2 = jax.block_until_ready(wrapper_forward(x, params, hw_tile=128))
    assert jnp.allclose(out2, ref, atol=2e-3, rtol=2e-3), \
        float(jnp.max(jnp.abs(out2 - ref)))

    print("KERNEL_OK")
</pallas_src>

<mosaic_0001>
module attributes {stable_mosaic.version = 11 : i64} {
  func.func @wrapper_kernel(%arg0: i32, %arg1: i32, %arg2: memref<2x4x256xf32, #tpu.memory_space<vmem>>, %arg3: memref<4x128xf32, #tpu.memory_space<vmem>>, %arg4: memref<1x128xf32, #tpu.memory_space<vmem>>, %arg5: memref<128x128xf32, #tpu.memory_space<vmem>>, %arg6: memref<1x128xf32, #tpu.memory_space<vmem>>, %arg7: memref<128x128xf32, #tpu.memory_space<vmem>>, %arg8: memref<1x128xf32, #tpu.memory_space<vmem>>, %arg9: memref<2x128xf32, #tpu.memory_space<vmem>>, %arg10: memref<2x4xf32, #tpu.memory_space<vmem>>) attributes {dimension_semantics = [#tpu.dimension_semantics<parallel>, #tpu.dimension_semantics<arbitrary>], iteration_bounds = array<i64: 1, 1>, scalar_prefetch = 0 : i64, scratch_operands = 1 : i64, tpu.core_type = #tpu.core_type<tc>, window_params = [{transform_indices = @transform_0, window_bounds = array<i64: 2, 4, 256>}, {pipeline_mode = #tpu.pipeline_mode<synchronous>, transform_indices = @transform_1, window_bounds = array<i64: 4, 128>}, {pipeline_mode = #tpu.pipeline_mode<synchronous>, transform_indices = @transform_2, window_bounds = array<i64: 1, 128>}, {pipeline_mode = #tpu.pipeline_mode<synchronous>, transform_indices = @transform_3, window_bounds = array<i64: 128, 128>}, {pipeline_mode = #tpu.pipeline_mode<synchronous>, transform_indices = @transform_4, window_bounds = array<i64: 1, 128>}, {pipeline_mode = #tpu.pipeline_mode<synchronous>, transform_indices = @transform_5, window_bounds = array<i64: 128, 128>}, {pipeline_mode = #tpu.pipeline_mode<synchronous>, transform_indices = @transform_6, window_bounds = array<i64: 1, 128>}, {transform_indices = @transform_7, window_bounds = array<i64: 2, 128>}]} {
    %c0_i32 = arith.constant 0 : i32
    %0 = arith.cmpi eq, %arg1, %c0_i32 : i32
    %1 = arith.extui %0 : i1 to i32
    %c0_i32_0 = arith.constant 0 : i32
    %2 = arith.cmpi ne, %1, %c0_i32_0 : i32
    scf.if %2 {
      %cst_9 = arith.constant 0.000000e+00 : f32
      %11 = vector.broadcast %cst_9 : f32 to vector<2x4xf32>
      %c0_10 = arith.constant 0 : index
      %c0_11 = arith.constant 0 : index
      %12 = vector.load %arg10[%c0_10, %c0_11] : memref<2x4xf32, #tpu.memory_space<vmem>>, vector<2x4xf32>
      tpu.vector_store %arg10[%c0_10, %c0_11], %11 {strides = array<i32>} : memref<2x4xf32, #tpu.memory_space<vmem>>, vector<2x4xf32>,
    } else {
    }
    %c0 = arith.constant 0 : index
    %c0_1 = arith.constant 0 : index
    %3 = vector.load %arg10[%c0, %c0_1] : memref<2x4xf32, #tpu.memory_space<vmem>>, vector<2x4xf32>
    %c0_2 = arith.constant 0 : index
    %c0_3 = arith.constant 0 : index
    %c0_4 = arith.constant 0 : index
    %4 = vector.load %arg2[%c0_2, %c0_3, %c0_4] : memref<2x4x256xf32, #tpu.memory_space<vmem>>, vector<2x4x256xf32>
    %cst = arith.constant dense<0.000000e+00> : vector<2x4xf32>
    %5 = vector.multi_reduction <add>, %4, %cst [2] : vector<2x4x256xf32> to vector<2x4xf32>
    %6 = arith.addf %3, %5 : vector<2x4xf32>
    %c0_5 = arith.constant 0 : index
    %c0_6 = arith.constant 0 : index
    %7 = vector.load %arg10[%c0_5, %c0_6] : memref<2x4xf32, #tpu.memory_space<vmem>>, vector<2x4xf32>
    tpu.vector_store %arg10[%c0_5, %c0_6], %6 {strides = array<i32>} : memref<2x4xf32, #tpu.memory_space<vmem>>, vector<2x4xf32>,
    %c0_i32_7 = arith.constant 0 : i32
    %8 = arith.cmpi eq, %arg1, %c0_i32_7 : i32
    %9 = arith.extui %8 : i1 to i32
    %c0_i32_8 = arith.constant 0 : i32
    %10 = arith.cmpi ne, %9, %c0_i32_8 : i32
    scf.if %10 {
      %c0_9 = arith.constant 0 : index
      %c0_10 = arith.constant 0 : index
      %11 = vector.load %arg10[%c0_9, %c0_10] : memref<2x4xf32, #tpu.memory_space<vmem>>, vector<2x4xf32>
      %cst_11 = arith.constant 3.906250e-03 : f32
      %12 = vector.broadcast %cst_11 : f32 to vector<2x4xf32>
      %13 = arith.mulf %11, %12 : vector<2x4xf32>
      %c0_12 = arith.constant 0 : index
      %c0_13 = arith.constant 0 : index
      %14 = vector.load %arg3[%c0_12, %c0_13] : memref<4x128xf32, #tpu.memory_space<vmem>>, vector<4x128xf32>
      %cst_14 = arith.constant dense<0.000000e+00> : vector<2x128xf32>
      %15 = tpu.matmul %13, %14, %cst_14 {dimension_numbers = #tpu.dot_dimension_numbers<[1], [0], [0], [1], [0, 0, 1, 1], [], []>} : vector<2x4xf32>, vector<4x128xf32>, vector<2x128xf32> -> vector<2x128xf32>
      %c0_15 = arith.constant 0 : index
      %c0_16 = arith.constant 0 : index
      %16 = vector.load %arg4[%c0_15, %c0_16] : memref<1x128xf32, #tpu.memory_space<vmem>>, vector<1x128xf32>
      %17 = vector.broadcast %16 : vector<1x128xf32> to vector<2x128xf32>
      %18 = arith.addf %15, %17 : vector<2x128xf32>
      %cst_17 = arith.constant 0.000000e+00 : f32
      %19 = vector.broadcast %cst_17 : f32 to vector<2x128xf32>
      %20 = arith.maximumf %18, %19 : vector<2x128xf32>
      %c0_18 = arith.constant 0 : index
      %c0_19 = arith.constant 0 : index
      %21 = vector.load %arg5[%c0_18, %c0_19] : memref<128x128xf32, #tpu.memory_space<vmem>>, vector<128x128xf32>
      %cst_20 = arith.constant dense<0.000000e+00> : vector<2x128xf32>
      %22 = tpu.matmul %20, %21, %cst_20 {dimension_numbers = #tpu.dot_dimension_numbers<[1], [0], [0], [1], [0, 0, 1, 1], [], []>} : vector<2x128xf32>, vector<128x128xf32>, vector<2x128xf32> -> vector<2x128xf32>
      %c0_21 = arith.constant 0 : index
      %c0_22 = arith.constant 0 : index
      %23 = vector.load %arg6[%c0_21, %c0_22] : memref<1x128xf32, #tpu.memory_space<vmem>>, vector<1x128xf32>
      %24 = vector.broadcast %23 : vector<1x128xf32> to vector<2x128xf32>
      %25 = arith.addf %22, %24 : vector<2x128xf32>
      %cst_23 = arith.constant 0.000000e+00 : f32
      %26 = vector.broadcast %cst_23 : f32 to vector<2x128xf32>
      %27 = arith.maximumf %25, %26 : vector<2x128xf32>
      %c0_24 = arith.constant 0 : index
      %c0_25 = arith.constant 0 : index
      %28 = vector.load %arg7[%c0_24, %c0_25] : memref<128x128xf32, #tpu.memory_space<vmem>>, vector<128x128xf32>
      %cst_26 = arith.constant dense<0.000000e+00> : vector<2x128xf32>
      %29 = tpu.matmul %27, %28, %cst_26 {dimension_numbers = #tpu.dot_dimension_numbers<[1], [0], [0], [1], [0, 0, 1, 1], [], []>} : vector<2x128xf32>, vector<128x128xf32>, vector<2x128xf32> -> vector<2x128xf32>
      %c0_27 = arith.constant 0 : index
      %c0_28 = arith.constant 0 : index
      %30 = vector.load %arg8[%c0_27, %c0_28] : memref<1x128xf32, #tpu.memory_space<vmem>>, vector<1x128xf32>
      %31 = vector.broadcast %30 : vector<1x128xf32> to vector<2x128xf32>
      %32 = arith.addf %29, %31 : vector<2x128xf32>
      %c0_29 = arith.constant 0 : index
      %c0_30 = arith.constant 0 : index
      %33 = vector.load %arg9[%c0_29, %c0_30] : memref<2x128xf32, #tpu.memory_space<vmem>>, vector<2x128xf32>
      tpu.vector_store %arg9[%c0_29, %c0_30], %32 {strides = array<i32>} : memref<2x128xf32, #tpu.memory_space<vmem>>, vector<2x128xf32>,
    } else {
    }
    return
  }
  func.func @transform_0(%arg0: i32, %arg1: i32) -> (i32, i32, i32) {
    %c0_i32 = arith.constant 0 : i32
    %c0_i32_0 = arith.constant 0 : i32
    return %arg0, %c0_i32, %arg1 : i32, i32, i32
  }
  func.func @transform_1(%arg0: i32, %arg1: i32) -> (i32, i32) {
    %c0_i32 = arith.constant 0 : i32
    %c0_i32_0 = arith.constant 0 : i32
    %c0_i32_1 = arith.constant 0 : i32
    return %c0_i32, %c0_i32_0 : i32, i32
  }
  func.func @transform_2(%arg0: i32, %arg1: i32) -> (i32, i32) {
    %c0_i32 = arith.constant 0 : i32
    %c0_i32_0 = arith.constant 0 : i32
    %c0_i32_1 = arith.constant 0 : i32
    return %c0_i32, %c0_i32_0 : i32, i32
  }
  func.func @transform_3(%arg0: i32, %arg1: i32) -> (i32, i32) {
    %c0_i32 = arith.constant 0 : i32
    %c0_i32_0 = arith.constant 0 : i32
    %c0_i32_1 = arith.constant 0 : i32
    return %c0_i32, %c0_i32_0 : i32, i32
  }
  func.func @transform_4(%arg0: i32, %arg1: i32) -> (i32, i32) {
    %c0_i32 = arith.constant 0 : i32
    %c0_i32_0 = arith.constant 0 : i32
    %c0_i32_1 = arith.constant 0 : i32
    return %c0_i32, %c0_i32_0 : i32, i32
  }
  func.func @transform_5(%arg0: i32, %arg1: i32) -> (i32, i32) {
    %c0_i32 = arith.constant 0 : i32
    %c0_i32_0 = arith.constant 0 : i32
    %c0_i32_1 = arith.constant 0 : i32
    return %c0_i32, %c0_i32_0 : i32, i32
  }
  func.func @transform_6(%arg0: i32, %arg1: i32) -> (i32, i32) {
    %c0_i32 = arith.constant 0 : i32
    %c0_i32_0 = arith.constant 0 : i32
    %c0_i32_1 = arith.constant 0 : i32
    return %c0_i32, %c0_i32_0 : i32, i32
  }
  func.func @transform_7(%arg0: i32, %arg1: i32) -> (i32, i32) {
    %c0_i32 = arith.constant 0 : i32
    %c0_i32_0 = arith.constant 0 : i32
    return %arg0, %c0_i32 : i32, i32
  }
}

module attributes {stable_mosaic.version = 11 : i64} {
  func.func @wrapper_kernel(%arg0: i32, %arg1: i32, %arg2: memref<2x4x256xf32, #tpu.memory_space<vmem>>, %arg3: memref<4x128xf32, #tpu.memory_space<vmem>>, %arg4: memref<1x128xf32, #tpu.memory_space<vmem>>, %arg5: memref<128x128xf32, #tpu.memory_space<vmem>>, %arg6: memref<1x128xf32, #tpu.memory_space<vmem>>, %arg7: memref<128x128xf32, #tpu.memory_space<vmem>>, %arg8: memref<1x128xf32, #tpu.memory_space<vmem>>, %arg9: memref<2x128xf32, #tpu.memory_space<vmem>>, %arg10: memref<2x4xf32, #tpu.memory_space<vmem>>) attributes {dimension_semantics = [#tpu.dimension_semantics<parallel>, #tpu.dimension_semantics<arbitrary>], iteration_bounds = array<i64: 1, 1>, scalar_prefetch = 0 : i64, scratch_operands = 1 : i64, tpu.core_type = #tpu.core_type<tc>, window_params = [{transform_indices = @transform_0, window_bounds = array<i64: 2, 4, 256>}, {pipeline_mode = #tpu.pipeline_mode<synchronous>, transform_indices = @transform_1, window_bounds = array<i64: 4, 128>}, {pipeline_mode = #tpu.pipeline_mode<synchronous>, transform_indices = @transform_2, window_bounds = array<i64: 1, 128>}, {pipeline_mode = #tpu.pipeline_mode<synchronous>, transform_indices = @transform_3, window_bounds = array<i64: 128, 128>}, {pipeline_mode = #tpu.pipeline_mode<synchronous>, transform_indices = @transform_4, window_bounds = array<i64: 1, 128>}, {pipeline_mode = #tpu.pipeline_mode<synchronous>, transform_indices = @transform_5, window_bounds = array<i64: 128, 128>}, {pipeline_mode = #tpu.pipeline_mode<synchronous>, transform_indices = @transform_6, window_bounds = array<i64: 1, 128>}, {transform_indices = @transform_7, window_bounds = array<i64: 2, 128>}]} {
    %c0_i32 = arith.constant 0 : i32
    %0 = arith.cmpi eq, %arg1, %c0_i32 : i32
    %1 = arith.extui %0 : i1 to i32
    %c0_i32_0 = arith.constant 0 : i32
    %2 = arith.cmpi ne, %1, %c0_i32_0 : i32
    scf.if %2 {
      %cst_9 = arith.constant 0.000000e+00 : f32
      %11 = vector.broadcast %cst_9 : f32 to vector<2x4xf32>
      %c0_10 = arith.constant 0 : index
      %c0_11 = arith.constant 0 : index
      %12 = vector.load %arg10[%c0_10, %c0_11] : memref<2x4xf32, #tpu.memory_space<vmem>>, vector<2x4xf32>
      tpu.vector_store %arg10[%c0_10, %c0_11], %11 {strides = array<i32>} : memref<2x4xf32, #tpu.memory_space<vmem>>, vector<2x4xf32>,
    } else {
    }
    %c0 = arith.constant 0 : index
    %c0_1 = arith.constant 0 : index
    %3 = vector.load %arg10[%c0, %c0_1] : memref<2x4xf32, #tpu.memory_space<vmem>>, vector<2x4xf32>
    %c0_2 = arith.constant 0 : index
    %c0_3 = arith.constant 0 : index
    %c0_4 = arith.constant 0 : index
    %4 = vector.load %arg2[%c0_2, %c0_3, %c0_4] : memref<2x4x256xf32, #tpu.memory_space<vmem>>, vector<2x4x256xf32>
    %cst = arith.constant dense<0.000000e+00> : vector<2x4xf32>
    %5 = vector.multi_reduction <add>, %4, %cst [2] : vector<2x4x256xf32> to vector<2x4xf32>
    %6 = arith.addf %3, %5 : vector<2x4xf32>
    %c0_5 = arith.constant 0 : index
    %c0_6 = arith.constant 0 : index
    %7 = vector.load %arg10[%c0_5, %c0_6] : memref<2x4xf32, #tpu.memory_space<vmem>>, vector<2x4xf32>
    tpu.vector_store %arg10[%c0_5, %c0_6], %6 {strides = array<i32>} : memref<2x4xf32, #tpu.memory_space<vmem>>, vector<2x4xf32>,
    %c0_i32_7 = arith.constant 0 : i32
    %8 = arith.cmpi eq, %arg1, %c0_i32_7 : i32
    %9 = arith.extui %8 : i1 to i32
    %c0_i32_8 = arith.constant 0 : i32
    %10 = arith.cmpi ne, %9, %c0_i32_8 : i32
    scf.if %10 {
      %c0_9 = arith.constant 0 : index
      %c0_10 = arith.constant 0 : index
      %11 = vector.load %arg10[%c0_9, %c0_10] : memref<2x4xf32, #tpu.memory_space<vmem>>, vector<2x4xf32>
      %cst_11 = arith.constant 3.906250e-03 : f32
      %12 = vector.broadcast %cst_11 : f32 to vector<2x4xf32>
      %13 = arith.mulf %11, %12 : vector<2x4xf32>
      %c0_12 = arith.constant 0 : index
      %c0_13 = arith.constant 0 : index
      %14 = vector.load %arg3[%c0_12, %c0_13] : memref<4x128xf32, #tpu.memory_space<vmem>>, vector<4x128xf32>
      %cst_14 = arith.constant dense<0.000000e+00> : vector<2x128xf32>
      %15 = tpu.matmul %13, %14, %cst_14 {dimension_numbers = #tpu.dot_dimension_numbers<[1], [0], [0], [1], [0, 0, 1, 1], [], []>} : vector<2x4xf32>, vector<4x128xf32>, vector<2x128xf32> -> vector<2x128xf32>
      %c0_15 = arith.constant 0 : index
      %c0_16 = arith.constant 0 : index
      %16 = vector.load %arg4[%c0_15, %c0_16] : memref<1x128xf32, #tpu.memory_space<vmem>>, vector<1x128xf32>
      %17 = vector.broadcast %16 : vector<1x128xf32> to vector<2x128xf32>
      %18 = arith.addf %15, %17 : vector<2x128xf32>
      %cst_17 = arith.constant 0.000000e+00 : f32
      %19 = vector.broadcast %cst_17 : f32 to vector<2x128xf32>
      %20 = arith.maximumf %18, %19 : vector<2x128xf32>
      %c0_18 = arith.constant 0 : index
      %c0_19 = arith.constant 0 : index
      %21 = vector.load %arg5[%c0_18, %c0_19] : memref<128x128xf32, #tpu.memory_space<vmem>>, vector<128x128xf32>
      %cst_20 = arith.constant dense<0.000000e+00> : vector<2x128xf32>
      %22 = tpu.matmul %20, %21, %cst_20 {dimension_numbers = #tpu.dot_dimension_numbers<[1], [0], [0], [1], [0, 0, 1, 1], [], []>} : vector<2x128xf32>, vector<128x128xf32>, vector<2x128xf32> -> vector<2x128xf32>
      %c0_21 = arith.constant 0 : index
      %c0_22 = arith.constant 0 : index
      %23 = vector.load %arg6[%c0_21, %c0_22] : memref<1x128xf32, #tpu.memory_space<vmem>>, vector<1x128xf32>
      %24 = vector.broadcast %23 : vector<1x128xf32> to vector<2x128xf32>
      %25 = arith.addf %22, %24 : vector<2x128xf32>
      %cst_23 = arith.constant 0.000000e+00 : f32
      %26 = vector.broadcast %cst_23 : f32 to vector<2x128xf32>
      %27 = arith.maximumf %25, %26 : vector<2x128xf32>
      %c0_24 = arith.constant 0 : index
      %c0_25 = arith.constant 0 : index
      %28 = vector.load %arg7[%c0_24, %c0_25] : memref<128x128xf32, #tpu.memory_space<vmem>>, vector<128x128xf32>
      %cst_26 = arith.constant dense<0.000000e+00> : vector<2x128xf32>
      %29 = tpu.matmul %27, %28, %cst_26 {dimension_numbers = #tpu.dot_dimension_numbers<[1], [0], [0], [1], [0, 0, 1, 1], [], []>} : vector<2x128xf32>, vector<128x128xf32>, vector<2x128xf32> -> vector<2x128xf32>
      %c0_27 = arith.constant 0 : index
      %c0_28 = arith.constant 0 : index
      %30 = vector.load %arg8[%c0_27, %c0_28] : memref<1x128xf32, #tpu.memory_space<vmem>>, vector<1x128xf32>
      %31 = vector.broadcast %30 : vector<1x128xf32> to vector<2x128xf32>
      %32 = arith.addf %29, %31 : vector<2x128xf32>
      %c0_29 = arith.constant 0 : index
      %c0_30 = arith.constant 0 : index
      %33 = vector.load %arg9[%c0_29, %c0_30] : memref<2x128xf32, #tpu.memory_space<vmem>>, vector<2x128xf32>
      tpu.vector_store %arg9[%c0_29, %c0_30], %32 {strides = array<i32>} : memref<2x128xf32, #tpu.memory_space<vmem>>, vector<2x128xf32>,
    } else {
    }
    return
  }
  func.func @transform_0(%arg0: i32, %arg1: i32) -> (i32, i32, i32) {
    %c0_i32 = arith.constant 0 : i32
    %c0_i32_0 = arith.constant 0 : i32
    return %arg0, %c0_i32, %arg1 : i32, i32, i32
  }
  func.func @transform_1(%arg0: i32, %arg1: i32) -> (i32, i32) {
    %c0_i32 = arith.constant 0 : i32
    %c0_i32_0 = arith.constant 0 : i32
    %c0_i32_1 = arith.constant 0 : i32
    return %c0_i32, %c0_i32_0 : i32, i32
  }
  func.func @transform_2(%arg0: i32, %arg1: i32) -> (i32, i32) {
    %c0_i32 = arith.constant 0 : i32
    %c0_i32_0 = arith.constant 0 : i32
    %c0_i32_1 = arith.constant 0 : i32
    return %c0_i32, %c0_i32_0 : i32, i32
  }
  func.func @transform_3(%arg0: i32, %arg1: i32) -> (i32, i32) {
    %c0_i32 = arith.constant 0 : i32
    %c0_i32_0 = arith.constant 0 : i32
    %c0_i32_1 = arith.constant 0 : i32
    return %c0_i32, %c0_i32_0 : i32, i32
  }
  func.func @transform_4(%arg0: i32, %arg1: i32) -> (i32, i32) {
    %c0_i32 = arith.constant 0 : i32
    %c0_i32_0 = arith.constant 0 : i32
    %c0_i32_1 = arith.constant 0 : i32
    return %c0_i32, %c0_i32_0 : i32, i32
  }
  func.func @transform_5(%arg0: i32, %arg1: i32) -> (i32, i32) {
    %c0_i32 = arith.constant 0 : i32
    %c0_i32_0 = arith.constant 0 : i32
    %c0_i32_1 = arith.constant 0 : i32
    return %c0_i32, %c0_i32_0 : i32, i32
  }
  func.func @transform_6(%arg0: i32, %arg1: i32) -> (i32, i32) {
    %c0_i32 = arith.constant 0 : i32
    %c0_i32_0 = arith.constant 0 : i32
    %c0_i32_1 = arith.constant 0 : i32
    return %c0_i32, %c0_i32_0 : i32, i32
  }
  func.func @transform_7(%arg0: i32, %arg1: i32) -> (i32, i32) {
    %c0_i32 = arith.constant 0 : i32
    %c0_i32_0 = arith.constant 0 : i32
    return %arg0, %c0_i32 : i32, i32
  }
}

</mosaic_0001>

<bundles_post_ra>
// kernel: tpu_custom_call.1
= control target key start
LH: loop header
LB: loop body
LE: loop exit
PB: predicated region body
PF: predicated region fallthrough
CT: control target
= control target key end

     0   :  { %12 = vsyncpa [#allocation4], 0  ;;  %s887_s0 = inlined_call_operand.hbm [shape: f32[2,4,256], index: 0, kind: input, shape index: {}]   ;;  %s888_s1 = inlined_call_operand.hbm [shape: f32[4,128], index: 1, kind: input, shape index: {}]   ;;  %s889_s2 = inlined_call_operand.vmem [shape: f32[1,128], index: 2, kind: input, shape index: {}]   ;;  %s890_s3 = inlined_call_operand.hbm [shape: f32[128,128], index: 3, kind: input, shape index: {}]   ;;  %s891_s4 = inlined_call_operand.vmem [shape: f32[1,128], index: 4, kind: input, shape index: {}]   ;;  %s892_s5 = inlined_call_operand.hbm [shape: f32[128,128], index: 5, kind: input, shape index: {}]   ;;  %s893_s6 = inlined_call_operand.vmem [shape: f32[1,128], index: 6, kind: input, shape index: {}]   ;;  %s894_s7 = inlined_call_operand.hbm [shape: f32[2,128], index: 7, kind: output, shape index: {}]  }
   0x1   :  { %13 = vsyncpa [#allocation7], 0 }
   0x2   :  { %14 = vsyncpa [#allocation10], 0 }
   0x3   :  { %15 = vsyncpa [#allocation5], 0  ;;  %s714_s24 = smov [#allocation6]   ;;  %s715_s26 = smov [#allocation3]  }
   0x4   :  { %s34_s25 = sshll.u32 %s714_s24, 4  ;;  %s21_s27 = sshll.u32 %s715_s26, 4  ;;  %s35_s25 = int_to_ptr.vmem [resolvable:$true] %s34_s25  ;;  %s764_s27 = int_to_ptr.vmem [resolvable:$true] %s21_s27 }
   0x5   :  { %s596_s30 = scalar_lea.hbm %s888_s1, 64 }
   0x6   :  { %p597_p0 = scmp.ne.s32.totalorder %s888_s1, %s596_s30  ;;  %p600_p1 = scmp.lt.u32.totalorder %s596_s30, %s888_s1 }
   0x8   :  { %p602_p2 = pnand %p600_p1, %p597_p0 }
   0xa   :  { %605 = shalt.err (!%p602_p2)
}
   0xb   :  { %s606_s12 = scalar_lea.vmem %s35_s25, 64  ;;  %p611_p4 = scmp.lt.s32.totalorder %s35_s25, %s35_s25 }
   0xc   :  { %p607_p3 = scmp.ne.s32.totalorder %s35_s25, %s606_s12  ;;  %p612_p5 = scmp.lt.s32.totalorder %s606_s12, %s606_s12 }
   0xe   :  { %p613_p6 = por %p612_p5, %p611_p4 }
  0x10   :  { %p614_p7 = pnand %p613_p6, %p607_p3 }
  0x12   :  { %617 = shalt.err (!%p614_p7)
}
  0x13   :  { %37 = dma.hbm_to_vmem [thread:$0]  %s888_s1, 64, %s35_s25, [#allocation7]  }
  0x14   :  { %s618_s17 = scalar_lea.hbm %s887_s0, 256 }
  0x15   :  { %p619_p8 = scmp.ne.s32.totalorder %s887_s0, %s618_s17  ;;  %p622_p9 = scmp.lt.u32.totalorder %s618_s17, %s887_s0 }
  0x17   :  { %p624_p10 = pnand %p622_p9, %p619_p8 }
  0x19   :  { %627 = shalt.err (!%p624_p10)
}
  0x1a   :  { %s628_s22 = scalar_lea.vmem %s764_s27, 256  ;;  %p633_p12 = scmp.lt.s32.totalorder %s764_s27, %s764_s27 }
  0x1b   :  { %p629_p11 = scmp.ne.s32.totalorder %s764_s27, %s628_s22  ;;  %p634_p13 = scmp.lt.s32.totalorder %s628_s22, %s628_s22 }
  0x1d   :  { %p635_p0 = por %p634_p13, %p633_p12 }
  0x1f   :  { %p636_p1 = pnand %p635_p0, %p629_p11 }
  0x21   :  { %639 = shalt.err (!%p636_p1)
}
  0x22   :  { %s716_s1 = smov 128   ;;  %s717_s23 = smov 8  }
  0x23   :  { %27 = dma.hbm_to_vmem [thread:$0]  %s887_s0, 256, %s764_s27, [#allocation4], %s716_s1, %s716_s1, %s717_s23  }
  0x24   :  { %s718_s26 = smov [#allocation8]   ;;  %s719_s29 = smov [#allocation9]  }
  0x25   :  { %s45_s28 = sshll.u32 %s718_s26, 4  ;;  %s59_s30 = sshll.u32 %s719_s29, 4  ;;  %s46_s28 = int_to_ptr.vmem [resolvable:$true] %s45_s28  ;;  %s798_s30 = int_to_ptr.vmem [resolvable:$true] %s59_s30 }
  0x26   :  { %s640_s10 = scalar_lea.hbm %s890_s3, 2048 }
  0x27   :  { %p641_p2 = scmp.ne.s32.totalorder %s890_s3, %s640_s10  ;;  %p644_p3 = scmp.lt.u32.totalorder %s640_s10, %s890_s3 }
  0x29   :  { %p646_p4 = pnand %p644_p3, %p641_p2 }
  0x2b   :  { %649 = shalt.err (!%p646_p4)
}
  0x2c   :  { %s650_s0 = scalar_lea.vmem %s46_s28, 2048  ;;  %p655_p6 = scmp.lt.s32.totalorder %s46_s28, %s46_s28 }
  0x2d   :  { %p651_p5 = scmp.ne.s32.totalorder %s46_s28, %s650_s0  ;;  %p656_p7 = scmp.lt.s32.totalorder %s650_s0, %s650_s0 }
  0x2f   :  { %p657_p8 = por %p656_p7, %p655_p6 }
  0x31   :  { %p658_p9 = pnand %p657_p8, %p651_p5 }
  0x33   :  { %661 = shalt.err (!%p658_p9)
}
  0x34   :  { %51 = dma.hbm_to_vmem [thread:$0]  %s890_s3, 2048, %s46_s28, [#allocation7], %s716_s1, %s716_s1, %s717_s23  }
  0x35   :  { %s662_s18 = scalar_lea.hbm %s892_s5, 2048 }
  0x36   :  { %p663_p10 = scmp.ne.s32.totalorder %s892_s5, %s662_s18  ;;  %p666_p11 = scmp.lt.u32.totalorder %s662_s18, %s892_s5 }
  0x38   :  { %p668_p12 = pnand %p666_p11, %p663_p10 }
  0x3a   :  { %671 = shalt.err (!%p668_p12)
}
  0x3b   :  { %s672_s24 = scalar_lea.vmem %s798_s30, 2048  ;;  %p677_p0 = scmp.lt.s32.totalorder %s798_s30, %s798_s30 }
  0x3c   :  { %p673_p13 = scmp.ne.s32.totalorder %s798_s30, %s672_s24  ;;  %p678_p1 = scmp.lt.s32.totalorder %s672_s24, %s672_s24 }
  0x3e   :  { %p679_p2 = por %p678_p1, %p677_p0 }
  0x40   :  { %p680_p3 = pnand %p679_p2, %p673_p13 }
  0x42   :  { %683 = shalt.err (!%p680_p3)
}
  0x43   :  { %65 = dma.hbm_to_vmem [thread:$0]  %s892_s5, 2048, %s798_s30, [#allocation10], %s716_s1, %s716_s1, %s717_s23  }
  0x44   :  { %706 = dma.done.wait [#allocation4], 256  }
  0x45   :  { %707 = vsyncadd [#allocation4], 4294967040 }
  0x46   :  { %708 = dma.done.wait [#allocation7], 2112  }
  0x47   :  { %709 = vsyncadd [#allocation7], 4294965184 }
  0x48   :  { %710 = dma.done.wait [#allocation10], 2048  }
  0x49   :  { %711 = vsyncadd [#allocation10], 4294965248  ;;  %vm95_vm0 = vcmask 1043456   ;;  %v87_v0 = vld [vmem:[#allocation3] sm:$0xff]  ;;  %v88_v1 = vld [vmem:[#allocation3 + $0x8] sm:$0xff]  ;;  %vm84_vm1 = vcmask 25600   ;;  %v108_v34 = vlaneseq }
  0x4a   :  { %v91_v2 = vcombine.high %v87_v0, %v87_v0  ;;  %v96_v3 = vsel %vm95_vm0, %v87_v0, 0.0  ;;  %v92_v4 = vcombine.high %v88_v1, %v88_v1  ;;  %v101_v6 = vsel %vm95_vm0, %v88_v1, 0.0  ;;  %v129_v11 = vld [vmem:[#allocation6] sm:$0xf]  ;;  %v215_v12 = vld [vmem:[#allocation8] sm:$0xff]  ;;  %v216_v13 = vld [vmem:[#allocation8 + $0x8] sm:$0xff] }
  0x4b   :  { %v720_v10 = vmov 0.0   ;;  %vm721_vm2 = vmmov 0   ;;  %v217_v14 = vld [vmem:[#allocation8 + $0x10] sm:$0xff]  ;;  %v722_v15 = vmov 0.0|0.0   ;;  %v537_v16 = vpack.c.bf16 %v216_v13, %v215_v12  ;;  %v218_v17 = vld [vmem:[#allocation8 + $0x18] sm:$0xff]  ;;  %v219_v19 = vld [vmem:[#allocation8 + $0x20] sm:$0xff] }
  0x4c   :  { %v97_v5 = vsel %vm95_vm0, %v91_v2, 0.0  ;;  %v102_v7 = vsel %vm95_vm0, %v92_v4, 0.0  ;;  %85 = vst.msk [vmem:[#allocation2] sm:$0x3] %vm84_vm1, %v720_v10  ;;  %461 = vmatprep.subr.mxu0 %v720_v10  ;;  %463 = vmatprep.mubr.msk.f32.mxu0 %vm721_vm2, %v720_v10  ;;  %v540_v18 = vpack.c.bf16 %v218_v17, %v217_v14  ;;  %v220_v20 = vld [vmem:[#allocation8 + $0x28] sm:$0xff]  ;;  %v221_v22 = vld [vmem:[#allocation8 + $0x30] sm:$0xff] }
  0x4d   :  { %v98_v8 = vadd.f32 %v97_v5, %v96_v3  ;;  %v103_v9 = vadd.f32 %v102_v7, %v101_v6  ;;  %462 = vmatpush3.msk.msra.mxu0 %vm95_vm0, %v129_v11  ;;  %498 = vmatprep.mubr.msk.f32.mxu1 %vm721_vm2, %v720_v10  ;;  %v543_v21 = vpack.c.bf16 %v220_v20, %v219_v19  ;;  %v222_v23 = vld [vmem:[#allocation8 + $0x38] sm:$0xff]  ;;  %v223_v25 = vld [vmem:[#allocation8 + $0x40] sm:$0xff]  ;;  %v224_v26 = vld [vmem:[#allocation8 + $0x48] sm:$0xff]  ;;  %v109_v35 = vand.u32 127, %v108_v34  ;;  %s723_s29 = smov [#allocation11]  }
  0x4e   :  { %536 = vmatprep.subr.bf16.mxu1 %v722_v15  ;;  %560 = vmatprep.subr.bf16.mxu0 %v722_v15  ;;  %v546_v24 = vpack.c.bf16 %v222_v23, %v221_v22  ;;  %v549_v27 = vpack.c.bf16 %v224_v26, %v223_v25  ;;  %v225_v28 = vld [vmem:[#allocation8 + $0x50] sm:$0xff]  ;;  %v226_v29 = vld [vmem:[#allocation8 + $0x58] sm:$0xff]  ;;  %v227_v31 = vld [vmem:[#allocation8 + $0x60] sm:$0xff]  ;;  %v111_v36 = vshrl.u32 %v108_v34, 7  ;;  %vm118_vm3 = vcmask 1041409   ;;  %s409_s30 = sshll.u32 %s723_s29, 4  ;;  %s410_s30 = int_to_ptr.vmem [resolvable:$true] %s409_s30 }
  0x4f   :  { %99 = vadd.xlane.f32.xlu0 %v98_v8  ;;  %538 = vmatpush3.bf16.msra.mxu1 %v537_v16  ;;  %v552_v30 = vpack.c.bf16 %v226_v29, %v225_v28  ;;  %v228_v32 = vld [vmem:[#allocation8 + $0x68] sm:$0xff]  ;;  %vm137_vm4 = vcmask 31744   ;;  %v229_v47 = vld [vmem:[#allocation8 + $0x70] sm:$0xff]  ;;  %v230_v48 = vld [vmem:[#allocation8 + $0x78] sm:$0xff]  ;;  %s684_s8 = scalar_lea.vmem %s410_s30, 32  ;;  %p689_p5 = scmp.lt.s32.totalorder %s410_s30, %s410_s30 }
  0x50   :  { %539 = vmatprep.subr.bf16.mxu1 %v722_v15  ;;  %v555_v33 = vpack.c.bf16 %v228_v32, %v227_v31  ;;  %v112_v38 = vsub.s32 %v109_v35, %v111_v36  ;;  %v558_v49 = vpack.c.bf16 %v230_v48, %v229_v47  ;;  %v309_v50 = vld [vmem:[#allocation9] sm:$0xff]  ;;  %v310_v51 = vld [vmem:[#allocation9 + $0x8] sm:$0xff]  ;;  %v311_v52 = vld [vmem:[#allocation9 + $0x10] sm:$0xff]  ;;  %p685_p4 = scmp.ne.s32.totalorder %s410_s30, %s684_s8  ;;  %p690_p6 = scmp.lt.s32.totalorder %s684_s8, %s684_s8 }
  0x51   :  { %v561_v53 = vpack.c.bf16 %v310_v51, %v309_v50  ;;  %v312_v54 = vld [vmem:[#allocation9 + $0x18] sm:$0xff]  ;;  %v313_v56 = vld [vmem:[#allocation9 + $0x20] sm:$0xff]  ;;  %v314_v57 = vld [vmem:[#allocation9 + $0x28] sm:$0xff] }
  0x52   :  { %v564_v55 = vpack.c.bf16 %v312_v54, %v311_v52  ;;  %v567_v58 = vpack.c.bf16 %v314_v57, %v313_v56  ;;  %v315_v59 = vld [vmem:[#allocation9 + $0x30] sm:$0xff]  ;;  %v316_v60 = vld [vmem:[#allocation9 + $0x38] sm:$0xff]  ;;  %v317_v62 = vld [vmem:[#allocation9 + $0x40] sm:$0xff]  ;;  %p691_p7 = por %p690_p6, %p689_p5 }
  0x53   :  { %104 = vadd.xlane.f32.xlu0 %v103_v9  ;;  %541 = vmatpush3.bf16.msra.mxu1 %v540_v18  ;;  %v86_v42 = vld [vmem:[#allocation2] sm:$0x3]  ;;  %v570_v61 = vpack.c.bf16 %v316_v60, %v315_v59  ;;  %v319_v1 = vld [vmem:[#allocation9 + $0x50] sm:$0xff]  ;;  %v320_v2 = vld [vmem:[#allocation9 + $0x58] sm:$0xff] }
  0x54   :  { %542 = vmatprep.subr.bf16.mxu1 %v722_v15  ;;  %v318_v63 = vld [vmem:[#allocation9 + $0x48] sm:$0xff]  ;;  %v576_v3 = vpack.c.bf16 %v320_v2, %v319_v1  ;;  %v321_v4 = vld [vmem:[#allocation9 + $0x60] sm:$0xff]  ;;  %v323_v12 = vld [vmem:[#allocation9 + $0x70] sm:$0xff]  ;;  %p692_p8 = pnand %p691_p7, %p685_p4 }
  0x55   :  { %v573_v0 = vpack.c.bf16 %v318_v63, %v317_v62  ;;  %v322_v5 = vld [vmem:[#allocation9 + $0x68] sm:$0xff]  ;;  %v324_v13 = vld [vmem:[#allocation9 + $0x78] sm:$0xff] }
  0x56   :  { %v579_v6 = vpack.c.bf16 %v322_v5, %v321_v4  ;;  %v420_v7 = vld [vmem:[%s889_s2] ss:$0 sm:$0xff]  ;;  %v582_v14 = vpack.c.bf16 %v324_v13, %v323_v12 }
  0x57   :  { %544 = vmatpush3.bf16.msra.mxu1 %v543_v21  ;;  %v423_v16 = vld [vmem:[%s891_s4] ss:$0 sm:$0xff] }
  0x58   :  { %545 = vmatprep.subr.bf16.mxu1 %v722_v15  ;;  %v424_v20 = vld [vmem:[%s893_s6] ss:$0 sm:$0xff] }
  0x5b   :  { %547 = vmatpush3.bf16.msra.mxu1 %v546_v24 }
  0x5c   :  { %548 = vmatprep.subr.bf16.mxu1 %v722_v15 }
  0x5f   :  { %550 = vmatpush3.bf16.msra.mxu1 %v549_v27 }
  0x60   :  { %551 = vmatprep.subr.bf16.mxu1 %v722_v15 }
  0x63   :  { %553 = vmatpush3.bf16.msra.mxu1 %v552_v30 }
  0x64   :  { %554 = vmatprep.subr.bf16.mxu1 %v722_v15 }
  0x67   :  { %556 = vmatpush3.bf16.msra.mxu1 %v555_v33 }
  0x68   :  { %557 = vmatprep.subr.bf16.mxu1 %v722_v15 }
  0x6b   :  { %559 = vmatpush3.bf16.msra.mxu1 %v558_v49 }
  0xdc   :  { %v100_v37 = vpop.xlane.xlu0 %99 }
  0xdd   :  { %v113_v40 = vrot.slane %v100_v37, %v112_v38 }
  0xe0   :  { %v105_v39 = vpop.xlane.xlu0 %104 }
  0xe1   :  { %v117_v41 = vrot.slane %v105_v39, %v112_v38 }
  0xe3   :  { %v119_v43 = vsel %vm118_vm3, %v117_v41, %v113_v40 }
  0xe4   :  { %v121_v44 = vadd.f32 %v119_v43, %v86_v42 }
  0xe6   :  { %123 = vst.msk [vmem:[#allocation2] sm:$0x3] %vm84_vm1, %v121_v44 }
  0xed   :  { %v127_v45 = vld [vmem:[#allocation2] sm:$0x3] }
  0xee   :  { %v128_v46 = vmul.f32 0.00390625, %v127_v45 }
  0xf0   :  { %464 = vmatmul.mubr.msk.f32.vlgmr.msra.gmra.mrb[0].mxu0 %vm137_vm4, %v128_v46 }
  0xf1   :  { %533 = vmatprep.mubr.msk.f32.mxu0 %vm721_vm2, %v720_v10  ;;  %562 = vmatpush3.bf16.msra.mxu0 %v561_v53 }
  0xf2   :  { %563 = vmatprep.subr.bf16.mxu0 %v722_v15 }
  0xf5   :  { %565 = vmatpush3.bf16.msra.mxu0 %v564_v55 }
  0xf6   :  { %566 = vmatprep.subr.bf16.mxu0 %v722_v15 }
  0xf9   :  { %568 = vmatpush3.bf16.msra.mxu0 %v567_v58 }
  0xfa   :  { %569 = vmatprep.subr.bf16.mxu0 %v722_v15 }
  0xfd   :  { %571 = vmatpush3.bf16.msra.mxu0 %v570_v61 }
  0xfe   :  { %572 = vmatprep.subr.bf16.mxu0 %v722_v15 }
 0x101   :  { %574 = vmatpush3.bf16.msra.mxu0 %v573_v0 }
 0x102   :  { %575 = vmatprep.subr.bf16.mxu0 %v722_v15 }
 0x105   :  { %577 = vmatpush3.bf16.msra.mxu0 %v576_v3 }
 0x106   :  { %578 = vmatprep.subr.bf16.mxu0 %v722_v15 }
 0x109   :  { %580 = vmatpush3.bf16.msra.mxu0 %v579_v6 }
 0x10a   :  { %581 = vmatprep.subr.bf16.mxu0 %v722_v15 }
 0x10d   :  { %583 = vmatpush3.bf16.msra.mxu0 %v582_v14 }
 0x1c3   :  { %v210_v8 = vpop.f32.mrb[0].mxu0 }
 0x1c4   :  { %v211_v9 = vadd.f32 %v420_v7, %v210_v8  ;;  %v465_v10 = vpop.f32.mrb[1].mxu0 }
 0x1c6   :  { %v214_v11 = vmax.f32 %v211_v9, 0.0 }
 0x1c8   :  { %499 = vmatmul.mubr.f32.vlgmr.msra.gmra.mrb[0].mxu1 %v214_v11 }
 0x29b   :  { %v304_v17 = vpop.f32.mrb[0].mxu1 }
 0x29c   :  { %v305_v18 = vadd.f32 %v423_v16, %v304_v17  ;;  %v500_v15 = vpop.f32.mrb[1].mxu1 }
 0x29e   :  { %v308_v19 = vmax.f32 %v305_v18, 0.0 }
 0x2a0   :  { %534 = vmatmul.mubr.f32.vlgmr.msra.gmra.mrb[2].mxu0 %v308_v19 }
 0x373   :  { %v398_v21 = vpop.f32.mrb[2].mxu0 }
 0x374   :  { %v399_v22 = vadd.f32 %v424_v20, %v398_v21  ;;  %v535_v23 = vpop.f32.mrb[3].mxu0 }
 0x376   :  { %402 = vst [vmem:[#allocation11] sm:$0x3] %v399_v22 }
 0x377   :  { %695 = shalt.err (!%p692_p8)
}
 0x378   :  { %s696_s10 = scalar_lea.hbm %s894_s7, 32 }
 0x379   :  { %p697_p9 = scmp.ne.s32.totalorder %s894_s7, %s696_s10  ;;  %p700_p10 = scmp.lt.u32.totalorder %s696_s10, %s894_s7 }
 0x37b   :  { %p702_p11 = pnand %p700_p10, %p697_p9 }
 0x37d   :  { %705 = shalt.err (!%p702_p11)
}
 0x37e   :  { %412 = dma.vmem_to_hbm [thread:$0]  %s410_s30, 32, %s894_s7, [#allocation5]  }
 0x37f   :  { %712 = dma.done.wait [#allocation5], 32  }
 0x380   :  { %713 = vsyncadd [#allocation5], 4294967264 }
 0x381   :  { %416 = vsyncpa [#allocation4], 1 }
 0x382   :  { %417 = vsyncpa [#allocation7], 1 }
 0x383   :  { %418 = vsyncpa [#allocation10], 1 }
 0x384   :  { %419 = vsyncpa [#allocation5], 1 }

// kernel: tpu_custom_call.1
= control target key start
LH: loop header
LB: loop body
LE: loop exit
PB: predicated region body
PF: predicated region fallthrough
CT: control target
= control target key end

     0   :  { %12 = vsyncpa [#allocation4], 0  ;;  %s887_s0 = inlined_call_operand.hbm [shape: f32[2,4,256], index: 0, kind: input, shape index: {}]   ;;  %s888_s1 = inlined_call_operand.hbm [shape: f32[4,128], index: 1, kind: input, shape index: {}]   ;;  %s889_s2 = inlined_call_operand.vmem [shape: f32[1,128], index: 2, kind: input, shape index: {}]   ;;  %s890_s3 = inlined_call_operand.hbm [shape: f32[128,128], index: 3, kind: input, shape index: {}]   ;;  %s891_s4 = inlined_call_operand.vmem [shape: f32[1,128], index: 4, kind: input, shape index: {}]   ;;  %s892_s5 = inlined_call_operand.hbm [shape: f32[128,128], index: 5, kind: input, shape index: {}]   ;;  %s893_s6 = inlined_call_operand.vmem [shape: f32[1,128], index: 6, kind: input, shape index: {}]   ;;  %s894_s7 = inlined_call_operand.hbm [shape: f32[2,128], index: 7, kind: output, shape index: {}]  }
   0x1   :  { %13 = vsyncpa [#allocation7], 0 }
   0x2   :  { %14 = vsyncpa [#allocation10], 0 }
   0x3   :  { %15 = vsyncpa [#allocation5], 0  ;;  %s714_s24 = smov [#allocation6]   ;;  %s715_s26 = smov [#allocation3]  }
   0x4   :  { %s34_s25 = sshll.u32 %s714_s24, 4  ;;  %s21_s27 = sshll.u32 %s715_s26, 4  ;;  %s35_s25 = int_to_ptr.vmem [resolvable:$true] %s34_s25  ;;  %s764_s27 = int_to_ptr.vmem [resolvable:$true] %s21_s27 }
   0x5   :  { %s596_s30 = scalar_lea.hbm %s888_s1, 64 }
   0x6   :  { %p597_p0 = scmp.ne.s32.totalorder %s888_s1, %s596_s30  ;;  %p600_p1 = scmp.lt.u32.totalorder %s596_s30, %s888_s1 }
   0x8   :  { %p602_p2 = pnand %p600_p1, %p597_p0 }
   0xa   :  { %605 = shalt.err (!%p602_p2)
}
   0xb   :  { %s606_s12 = scalar_lea.vmem %s35_s25, 64  ;;  %p611_p4 = scmp.lt.s32.totalorder %s35_s25, %s35_s25 }
   0xc   :  { %p607_p3 = scmp.ne.s32.totalorder %s35_s25, %s606_s12  ;;  %p612_p5 = scmp.lt.s32.totalorder %s606_s12, %s606_s12 }
   0xe   :  { %p613_p6 = por %p612_p5, %p611_p4 }
  0x10   :  { %p614_p7 = pnand %p613_p6, %p607_p3 }
  0x12   :  { %617 = shalt.err (!%p614_p7)
}
  0x13   :  { %37 = dma.hbm_to_vmem [thread:$0]  %s888_s1, 64, %s35_s25, [#allocation7]  }
  0x14   :  { %s618_s17 = scalar_lea.hbm %s887_s0, 256 }
  0x15   :  { %p619_p8 = scmp.ne.s32.totalorder %s887_s0, %s618_s17  ;;  %p622_p9 = scmp.lt.u32.totalorder %s618_s17, %s887_s0 }
  0x17   :  { %p624_p10 = pnand %p622_p9, %p619_p8 }
  0x19   :  { %627 = shalt.err (!%p624_p10)
}
  0x1a   :  { %s628_s22 = scalar_lea.vmem %s764_s27, 256  ;;  %p633_p12 = scmp.lt.s32.totalorder %s764_s27, %s764_s27 }
  0x1b   :  { %p629_p11 = scmp.ne.s32.totalorder %s764_s27, %s628_s22  ;;  %p634_p13 = scmp.lt.s32.totalorder %s628_s22, %s628_s22 }
  0x1d   :  { %p635_p0 = por %p634_p13, %p633_p12 }
  0x1f   :  { %p636_p1 = pnand %p635_p0, %p629_p11 }
  0x21   :  { %639 = shalt.err (!%p636_p1)
}
  0x22   :  { %s716_s1 = smov 128   ;;  %s717_s23 = smov 8  }
  0x23   :  { %27 = dma.hbm_to_vmem [thread:$0]  %s887_s0, 256, %s764_s27, [#allocation4], %s716_s1, %s716_s1, %s717_s23  }
  0x24   :  { %s718_s26 = smov [#allocation8]   ;;  %s719_s29 = smov [#allocation9]  }
  0x25   :  { %s45_s28 = sshll.u32 %s718_s26, 4  ;;  %s59_s30 = sshll.u32 %s719_s29, 4  ;;  %s46_s28 = int_to_ptr.vmem [resolvable:$true] %s45_s28  ;;  %s798_s30 = int_to_ptr.vmem [resolvable:$true] %s59_s30 }
  0x26   :  { %s640_s10 = scalar_lea.hbm %s890_s3, 2048 }
  0x27   :  { %p641_p2 = scmp.ne.s32.totalorder %s890_s3, %s640_s10  ;;  %p644_p3 = scmp.lt.u32.totalorder %s640_s10, %s890_s3 }
  0x29   :  { %p646_p4 = pnand %p644_p3, %p641_p2 }
  0x2b   :  { %649 = shalt.err (!%p646_p4)
}
  0x2c   :  { %s650_s0 = scalar_lea.vmem %s46_s28, 2048  ;;  %p655_p6 = scmp.lt.s32.totalorder %s46_s28, %s46_s28 }
  0x2d   :  { %p651_p5 = scmp.ne.s32.totalorder %s46_s28, %s650_s0  ;;  %p656_p7 = scmp.lt.s32.totalorder %s650_s0, %s650_s0 }
  0x2f   :  { %p657_p8 = por %p656_p7, %p655_p6 }
  0x31   :  { %p658_p9 = pnand %p657_p8, %p651_p5 }
  0x33   :  { %661 = shalt.err (!%p658_p9)
}
  0x34   :  { %51 = dma.hbm_to_vmem [thread:$0]  %s890_s3, 2048, %s46_s28, [#allocation7], %s716_s1, %s716_s1, %s717_s23  }
  0x35   :  { %s662_s18 = scalar_lea.hbm %s892_s5, 2048 }
  0x36   :  { %p663_p10 = scmp.ne.s32.totalorder %s892_s5, %s662_s18  ;;  %p666_p11 = scmp.lt.u32.totalorder %s662_s18, %s892_s5 }
  0x38   :  { %p668_p12 = pnand %p666_p11, %p663_p10 }
  0x3a   :  { %671 = shalt.err (!%p668_p12)
}
  0x3b   :  { %s672_s24 = scalar_lea.vmem %s798_s30, 2048  ;;  %p677_p0 = scmp.lt.s32.totalorder %s798_s30, %s798_s30 }
  0x3c   :  { %p673_p13 = scmp.ne.s32.totalorder %s798_s30, %s672_s24  ;;  %p678_p1 = scmp.lt.s32.totalorder %s672_s24, %s672_s24 }
  0x3e   :  { %p679_p2 = por %p678_p1, %p677_p0 }
  0x40   :  { %p680_p3 = pnand %p679_p2, %p673_p13 }
  0x42   :  { %683 = shalt.err (!%p680_p3)
}
  0x43   :  { %65 = dma.hbm_to_vmem [thread:$0]  %s892_s5, 2048, %s798_s30, [#allocation10], %s716_s1, %s716_s1, %s717_s23  }
  0x44   :  { %706 = dma.done.wait [#allocation4], 256  }
  0x45   :  { %707 = vsyncadd [#allocation4], 4294967040 }
  0x46   :  { %708 = dma.done.wait [#allocation7], 2112  }
  0x47   :  { %709 = vsyncadd [#allocation7], 4294965184 }
  0x48   :  { %710 = dma.done.wait [#allocation10], 2048  }
  0x49   :  { %711 = vsyncadd [#allocation10], 4294965248  ;;  %vm95_vm0 = vcmask 1043456   ;;  %v87_v0 = vld [vmem:[#allocation3] sm:$0xff]  ;;  %v88_v1 = vld [vmem:[#allocation3 + $0x8] sm:$0xff]  ;;  %vm84_vm1 = vcmask 25600   ;;  %v108_v34 = vlaneseq }
  0x4a   :  { %v91_v2 = vcombine.high %v87_v0, %v87_v0  ;;  %v96_v3 = vsel %vm95_vm0, %v87_v0, 0.0  ;;  %v92_v4 = vcombine.high %v88_v1, %v88_v1  ;;  %v101_v6 = vsel %vm95_vm0, %v88_v1, 0.0  ;;  %v129_v11 = vld [vmem:[#allocation6] sm:$0xf]  ;;  %v215_v12 = vld [vmem:[#allocation8] sm:$0xff]  ;;  %v216_v13 = vld [vmem:[#allocation8 + $0x8] sm:$0xff] }
  0x4b   :  { %v720_v10 = vmov 0.0   ;;  %vm721_vm2 = vmmov 0   ;;  %v217_v14 = vld [vmem:[#allocation8 + $0x10] sm:$0xff]  ;;  %v722_v15 = vmov 0.0|0.0   ;;  %v537_v16 = vpack.c.bf16 %v216_v13, %v215_v12  ;;  %v218_v17 = vld [vmem:[#allocation8 + $0x18] sm:$0xff]  ;;  %v219_v19 = vld [vmem:[#allocation8 + $0x20] sm:$0xff] }
  0x4c   :  { %v97_v5 = vsel %vm95_vm0, %v91_v2, 0.0  ;;  %v102_v7 = vsel %vm95_vm0, %v92_v4, 0.0  ;;  %85 = vst.msk [vmem:[#allocation2] sm:$0x3] %vm84_vm1, %v720_v10  ;;  %461 = vmatprep.subr.mxu0 %v720_v10  ;;  %463 = vmatprep.mubr.msk.f32.mxu0 %vm721_vm2, %v720_v10  ;;  %v540_v18 = vpack.c.bf16 %v218_v17, %v217_v14  ;;  %v220_v20 = vld [vmem:[#allocation8 + $0x28] sm:$0xff]  ;;  %v221_v22 = vld [vmem:[#allocation8 + $0x30] sm:$0xff] }
  0x4d   :  { %v98_v8 = vadd.f32 %v97_v5, %v96_v3  ;;  %v103_v9 = vadd.f32 %v102_v7, %v101_v6  ;;  %462 = vmatpush3.msk.msra.mxu0 %vm95_vm0, %v129_v11  ;;  %498 = vmatprep.mubr.msk.f32.mxu1 %vm721_vm2, %v720_v10  ;;  %v543_v21 = vpack.c.bf16 %v220_v20, %v219_v19  ;;  %v222_v23 = vld [vmem:[#allocation8 + $0x38] sm:$0xff]  ;;  %v223_v25 = vld [vmem:[#allocation8 + $0x40] sm:$0xff]  ;;  %v224_v26 = vld [vmem:[#allocation8 + $0x48] sm:$0xff]  ;;  %v109_v35 = vand.u32 127, %v108_v34  ;;  %s723_s29 = smov [#allocation11]  }
  0x4e   :  { %536 = vmatprep.subr.bf16.mxu1 %v722_v15  ;;  %560 = vmatprep.subr.bf16.mxu0 %v722_v15  ;;  %v546_v24 = vpack.c.bf16 %v222_v23, %v221_v22  ;;  %v549_v27 = vpack.c.bf16 %v224_v26, %v223_v25  ;;  %v225_v28 = vld [vmem:[#allocation8 + $0x50] sm:$0xff]  ;;  %v226_v29 = vld [vmem:[#allocation8 + $0x58] sm:$0xff]  ;;  %v227_v31 = vld [vmem:[#allocation8 + $0x60] sm:$0xff]  ;;  %v111_v36 = vshrl.u32 %v108_v34, 7  ;;  %vm118_vm3 = vcmask 1041409   ;;  %s409_s30 = sshll.u32 %s723_s29, 4  ;;  %s410_s30 = int_to_ptr.vmem [resolvable:$true] %s409_s30 }
  0x4f   :  { %99 = vadd.xlane.f32.xlu0 %v98_v8  ;;  %538 = vmatpush3.bf16.msra.mxu1 %v537_v16  ;;  %v552_v30 = vpack.c.bf16 %v226_v29, %v225_v28  ;;  %v228_v32 = vld [vmem:[#allocation8 + $0x68] sm:$0xff]  ;;  %vm137_vm4 = vcmask 31744   ;;  %v229_v47 = vld [vmem:[#allocation8 + $0x70] sm:$0xff]  ;;  %v230_v48 = vld [vmem:[#allocation8 + $0x78] sm:$0xff]  ;;  %s684_s8 = scalar_lea.vmem %s410_s30, 32  ;;  %p689_p5 = scmp.lt.s32.totalorder %s410_s30, %s410_s30 }
  0x50   :  { %539 = vmatprep.subr.bf16.mxu1 %v722_v15  ;;  %v555_v33 = vpack.c.bf16 %v228_v32, %v227_v31  ;;  %v112_v38 = vsub.s32 %v109_v35, %v111_v36  ;;  %v558_v49 = vpack.c.bf16 %v230_v48, %v229_v47  ;;  %v309_v50 = vld [vmem:[#allocation9] sm:$0xff]  ;;  %v310_v51 = vld [vmem:[#allocation9 + $0x8] sm:$0xff]  ;;  %v311_v52 = vld [vmem:[#allocation9 + $0x10] sm:$0xff]  ;;  %p685_p4 = scmp.ne.s32.totalorder %s410_s30, %s684_s8  ;;  %p690_p6 = scmp.lt.s32.totalorder %s684_s8, %s684_s8 }
  0x51   :  { %v561_v53 = vpack.c.bf16 %v310_v51, %v309_v50  ;;  %v312_v54 = vld [vmem:[#allocation9 + $0x18] sm:$0xff]  ;;  %v313_v56 = vld [vmem:[#allocation9 + $0x20] sm:$0xff]  ;;  %v314_v57 = vld [vmem:[#allocation9 + $0x28] sm:$0xff] }
  0x52   :  { %v564_v55 = vpack.c.bf16 %v312_v54, %v311_v52  ;;  %v567_v58 = vpack.c.bf16 %v314_v57, %v313_v56  ;;  %v315_v59 = vld [vmem:[#allocation9 + $0x30] sm:$0xff]  ;;  %v316_v60 = vld [vmem:[#allocation9 + $0x38] sm:$0xff]  ;;  %v317_v62 = vld [vmem:[#allocation9 + $0x40] sm:$0xff]  ;;  %p691_p7 = por %p690_p6, %p689_p5 }
  0x53   :  { %104 = vadd.xlane.f32.xlu0 %v103_v9  ;;  %541 = vmatpush3.bf16.msra.mxu1 %v540_v18  ;;  %v86_v42 = vld [vmem:[#allocation2] sm:$0x3]  ;;  %v570_v61 = vpack.c.bf16 %v316_v60, %v315_v59  ;;  %v319_v1 = vld [vmem:[#allocation9 + $0x50] sm:$0xff]  ;;  %v320_v2 = vld [vmem:[#allocation9 + $0x58] sm:$0xff] }
  0x54   :  { %542 = vmatprep.subr.bf16.mxu1 %v722_v15  ;;  %v318_v63 = vld [vmem:[#allocation9 + $0x48] sm:$0xff]  ;;  %v576_v3 = vpack.c.bf16 %v320_v2, %v319_v1  ;;  %v321_v4 = vld [vmem:[#allocation9 + $0x60] sm:$0xff]  ;;  %v323_v12 = vld [vmem:[#allocation9 + $0x70] sm:$0xff]  ;;  %p692_p8 = pnand %p691_p7, %p685_p4 }
  0x55   :  { %v573_v0 = vpack.c.bf16 %v318_v63, %v317_v62  ;;  %v322_v5 = vld [vmem:[#allocation9 + $0x68] sm:$0xff]  ;;  %v324_v13 = vld [vmem:[#allocation9 + $0x78] sm:$0xff] }
  0x56   :  { %v579_v6 = vpack.c.bf16 %v322_v5, %v321_v4  ;;  %v420_v7 = vld [vmem:[%s889_s2] ss:$0 sm:$0xff]  ;;  %v582_v14 = vpack.c.bf16 %v324_v13, %v323_v12 }
  0x57   :  { %544 = vmatpush3.bf16.msra.mxu1 %v543_v21  ;;  %v423_v16 = vld [vmem:[%s891_s4] ss:$0 sm:$0xff] }
  0x58   :  { %545 = vmatprep.subr.bf16.mxu1 %v722_v15  ;;  %v424_v20 = vld [vmem:[%s893_s6] ss:$0 sm:$0xff] }
  0x5b   :  { %547 = vmatpush3.bf16.msra.mxu1 %v546_v24 }
  0x5c   :  { %548 = vmatprep.subr.bf16.mxu1 %v722_v15 }
  0x5f   :  { %550 = vmatpush3.bf16.msra.mxu1 %v549_v27 }
  0x60   :  { %551 = vmatprep.subr.bf16.mxu1 %v722_v15 }
  0x63   :  { %553 = vmatpush3.bf16.msra.mxu1 %v552_v30 }
  0x64   :  { %554 = vmatprep.subr.bf16.mxu1 %v722_v15 }
  0x67   :  { %556 = vmatpush3.bf16.msra.mxu1 %v555_v33 }
  0x68   :  { %557 = vmatprep.subr.bf16.mxu1 %v722_v15 }
  0x6b   :  { %559 = vmatpush3.bf16.msra.mxu1 %v558_v49 }
  0xdc   :  { %v100_v37 = vpop.xlane.xlu0 %99 }
  0xdd   :  { %v113_v40 = vrot.slane %v100_v37, %v112_v38 }
  0xe0   :  { %v105_v39 = vpop.xlane.xlu0 %104 }
  0xe1   :  { %v117_v41 = vrot.slane %v105_v39, %v112_v38 }
  0xe3   :  { %v119_v43 = vsel %vm118_vm3, %v117_v41, %v113_v40 }
  0xe4   :  { %v121_v44 = vadd.f32 %v119_v43, %v86_v42 }
  0xe6   :  { %123 = vst.msk [vmem:[#allocation2] sm:$0x3] %vm84_vm1, %v121_v44 }
  0xed   :  { %v127_v45 = vld [vmem:[#allocation2] sm:$0x3] }
  0xee   :  { %v128_v46 = vmul.f32 0.00390625, %v127_v45 }
  0xf0   :  { %464 = vmatmul.mubr.msk.f32.vlgmr.msra.gmra.mrb[0].mxu0 %vm137_vm4, %v128_v46 }
  0xf1   :  { %533 = vmatprep.mubr.msk.f32.mxu0 %vm721_vm2, %v720_v10  ;;  %562 = vmatpush3.bf16.msra.mxu0 %v561_v53 }
  0xf2   :  { %563 = vmatprep.subr.bf16.mxu0 %v722_v15 }
  0xf5   :  { %565 = vmatpush3.bf16.msra.mxu0 %v564_v55 }
  0xf6   :  { %566 = vmatprep.subr.bf16.mxu0 %v722_v15 }
  0xf9   :  { %568 = vmatpush3.bf16.msra.mxu0 %v567_v58 }
  0xfa   :  { %569 = vmatprep.subr.bf16.mxu0 %v722_v15 }
  0xfd   :  { %571 = vmatpush3.bf16.msra.mxu0 %v570_v61 }
  0xfe   :  { %572 = vmatprep.subr.bf16.mxu0 %v722_v15 }
 0x101   :  { %574 = vmatpush3.bf16.msra.mxu0 %v573_v0 }
 0x102   :  { %575 = vmatprep.subr.bf16.mxu0 %v722_v15 }
 0x105   :  { %577 = vmatpush3.bf16.msra.mxu0 %v576_v3 }
 0x106   :  { %578 = vmatprep.subr.bf16.mxu0 %v722_v15 }
 0x109   :  { %580 = vmatpush3.bf16.msra.mxu0 %v579_v6 }
 0x10a   :  { %581 = vmatprep.subr.bf16.mxu0 %v722_v15 }
 0x10d   :  { %583 = vmatpush3.bf16.msra.mxu0 %v582_v14 }
 0x1c3   :  { %v210_v8 = vpop.f32.mrb[0].mxu0 }
 0x1c4   :  { %v211_v9 = vadd.f32 %v420_v7, %v210_v8  ;;  %v465_v10 = vpop.f32.mrb[1].mxu0 }
 0x1c6   :  { %v214_v11 = vmax.f32 %v211_v9, 0.0 }
 0x1c8   :  { %499 = vmatmul.mubr.f32.vlgmr.msra.gmra.mrb[0].mxu1 %v214_v11 }
 0x29b   :  { %v304_v17 = vpop.f32.mrb[0].mxu1 }
 0x29c   :  { %v305_v18 = vadd.f32 %v423_v16, %v304_v17  ;;  %v500_v15 = vpop.f32.mrb[1].mxu1 }
 0x29e   :  { %v308_v19 = vmax.f32 %v305_v18, 0.0 }
 0x2a0   :  { %534 = vmatmul.mubr.f32.vlgmr.msra.gmra.mrb[2].mxu0 %v308_v19 }
 0x373   :  { %v398_v21 = vpop.f32.mrb[2].mxu0 }
 0x374   :  { %v399_v22 = vadd.f32 %v424_v20, %v398_v21  ;;  %v535_v23 = vpop.f32.mrb[3].mxu0 }
 0x376   :  { %402 = vst [vmem:[#allocation11] sm:$0x3] %v399_v22 }
 0x377   :  { %695 = shalt.err (!%p692_p8)
}
 0x378   :  { %s696_s10 = scalar_lea.hbm %s894_s7, 32 }
 0x379   :  { %p697_p9 = scmp.ne.s32.totalorder %s894_s7, %s696_s10  ;;  %p700_p10 = scmp.lt.u32.totalorder %s696_s10, %s894_s7 }
 0x37b   :  { %p702_p11 = pnand %p700_p10, %p697_p9 }
 0x37d   :  { %705 = shalt.err (!%p702_p11)
}
 0x37e   :  { %412 = dma.vmem_to_hbm [thread:$0]  %s410_s30, 32, %s894_s7, [#allocation5]  }
 0x37f   :  { %712 = dma.done.wait [#allocation5], 32  }
 0x380   :  { %713 = vsyncadd [#allocation5], 4294967264 }
 0x381   :  { %416 = vsyncpa [#allocation4], 1 }
 0x382   :  { %417 = vsyncpa [#allocation7], 1 }
 0x383   :  { %418 = vsyncpa [#allocation10], 1 }
 0x384   :  { %419 = vsyncpa [#allocation5], 1 }

</bundles_post_ra>
